<compile_context>
chip_gen: v7x
topology: tpu7x:2x2x1
jax: 0.10.0
libtpu: 0.0.40
codegen_flags: <defaults>
</compile_context>

<pallas_src>
import functools

import jax
import jax.numpy as jnp
from jax.experimental import pallas as pl
from jax.experimental.pallas import tpu as pltpu


def _round_up(x, m):
    return ((x + m - 1) // m) * m


def _fused_mlp_kernel(x_ref, w_ref, b_ref, o_ref):
    """Whole tanh-MLP on one batch tile, everything resident in VMEM.

    x_ref: (tile_n, d_in)   true-width input (no 128-lane padding in HBM)
    w_ref: (L, PAD, PAD)    zero-padded weight slab, resident across the grid
    b_ref: (L, 1, PAD)      zero-padded bias slab
    o_ref: (tile_n, 1)      true-width output (column 0 of the padded act)
    """
    n_layers = w_ref.shape[0]
    d_in = x_ref.shape[1]
    x = x_ref[...]  # (tile_n, d_in)

    # Layer 0: d_in is tiny (PINN coordinates), so use d_in broadcast
    # multiply-adds on the VPU instead of a degenerate K=d_in MXU matmul.
    z = b_ref[0]  # (1, PAD), broadcasts over the batch tile
    for c in range(d_in):
        z = z + x[:, c:c + 1] * w_ref[0, c:c + 1, :]
    act = jnp.tanh(z)  # (tile_n, PAD)

    # Layers 1..L-1: MXU matmul (f32 acc) + bias + tanh (EUP), all in VMEM.
    for l in range(1, n_layers):
        zl = jnp.dot(act, w_ref[l], preferred_element_type=jnp.float32)
        act = jnp.tanh(zl + b_ref[l])

    # True output lives in column 0 of the padded activation.
    o_ref[...] = act[:, :1]


def fused_mlp(x, w_slab, b_slab, *, tile_n):
    """x: (N_pad, d_in), w_slab: (L, PAD, PAD), b_slab: (L, 1, PAD) -> (N_pad, 1)."""
    n_pad, d_in = x.shape
    n_layers, pad, _ = w_slab.shape
    grid = (pl.cdiv(n_pad, tile_n),)
    return pl.pallas_call(
        _fused_mlp_kernel,
        out_shape=jax.ShapeDtypeStruct((n_pad, 1), jnp.float32),
        grid_spec=pltpu.PrefetchScalarGridSpec(
            num_scalar_prefetch=0,
            grid=grid,
            in_specs=[
                # True-width input: last dim == full array dim, rows tiled.
                pl.BlockSpec((tile_n, d_in), lambda i: (i, 0)),
                # Constant index_map -> weight/bias slabs DMA'd once, resident.
                pl.BlockSpec((n_layers, pad, pad), lambda i: (0, 0, 0)),
                pl.BlockSpec((n_layers, 1, pad), lambda i: (0, 0, 0)),
            ],
            # True-width (width-1) output: ~128x less writeback than a padded slab.
            out_specs=pl.BlockSpec((tile_n, 1), lambda i: (i, 0)),
        ),
        compiler_params=pltpu.CompilerParams(
            dimension_semantics=("parallel",),
            vmem_limit_bytes=32 * 1024 * 1024,
        ),
    )(x, w_slab, b_slab)


class FunctionalPallas:
    """JAX/Pallas equivalent of the PyTorch `Functional` module."""

    # Largest batch tile per grid step. With true-width I/O the per-tile VMEM
    # footprint is ~3.5 KiB/row (in+out double-buffered + padded activations),
    # so 4096 rows is ~15 MiB: fits v5e/v6e/v7x under the 32 MiB scoped limit.
    _MAX_TILE_N = 4096

    def __init__(self, input_size, layer_sizes, key):
        dims = [input_size] + list(layer_sizes) + [1]
        n_layers = len(dims) - 1
        pad = _round_up(max(max(dims), 128), 128)

        self.dims = dims
        self.n_layers = n_layers
        self.pad = pad

        # PyTorch nn.Linear default init: U(-1/sqrt(fan_in), 1/sqrt(fan_in)).
        keys = jax.random.split(key, 2 * n_layers)
        w_slab = jnp.zeros((n_layers, pad, pad), jnp.float32)
        b_slab = jnp.zeros((n_layers, 1, pad), jnp.float32)
        self.params = []  # unpadded (W (in,out), b (1,out)) for reference math
        for l, (d_in, d_out) in enumerate(zip(dims[:-1], dims[1:])):
            bound = float(d_in) ** -0.5
            w = jax.random.uniform(
                keys[2 * l], (d_in, d_out), jnp.float32, -bound, bound)
            b = jax.random.uniform(
                keys[2 * l + 1], (1, d_out), jnp.float32, -bound, bound)
            self.params.append((w, b))
            w_slab = w_slab.at[l, :d_in, :d_out].set(w)
            b_slab = b_slab.at[l, :, :d_out].set(b)
        self.w_slab = w_slab
        self.b_slab = b_slab

    @functools.partial(jax.jit, static_argnums=0)
    def __call__(self, inputs):
        x = inputs.astype(jnp.float32)
        n, _ = x.shape

        # Pad rows to a sublane multiple only (8 B/row of traffic, not 512).
        n_pad = _round_up(max(n, 8), 8)
        if n_pad != n:
            x = jnp.pad(x, ((0, n_pad - n), (0, 0)))

        # Pick the batch tile: cap at _MAX_TILE_N, but aim for >= 2 grid steps
        # so the "parallel" batch axis shards across both v7x TensorCores.
        half = _round_up(pl.cdiv(n_pad, 2), 8)
        tile_n = min(self._MAX_TILE_N, max(8, half))

        out = fused_mlp(x, self.w_slab, self.b_slab, tile_n=tile_n)
        # Drop padded rows and squeeze, matching torch.squeeze of (N, 1).
        return jnp.squeeze(out[:n, 0])


if __name__ == "__main__":
    key = jax.random.PRNGKey(0)
    k_param, k_in = jax.random.split(key)

    input_size = 2            # typical PINN input: (x, t)
    layer_sizes = [32, 32, 32]
    batch = 32

    model = FunctionalPallas(input_size, layer_sizes, k_param)
    x = jax.random.normal(k_in, (batch, input_size), dtype=jnp.float32)

    y = model(x)
    jax.block_until_ready(y)

    # Pure-JAX reference (unpadded params) for numerical sanity.
    ref = x.astype(jnp.float32)
    for w, b in model.params:
        ref = jnp.tanh(ref @ w + b)
    ref = jnp.squeeze(ref)

    assert y.shape == (batch,), y.shape
    assert bool(jnp.all(jnp.isfinite(y)))
    assert bool(jnp.allclose(y, ref, atol=1e-4, rtol=1e-4))
    print("KERNEL_OK")
</pallas_src>

<mosaic_0001>
module attributes {stable_mosaic.version = 11 : i64} {
  func.func @_fused_mlp_kernel(%arg0: i32, %arg1: memref<16x2xf32, #tpu.memory_space<vmem>>, %arg2: memref<4x128x128xf32, #tpu.memory_space<vmem>>, %arg3: memref<4x1x128xf32, #tpu.memory_space<vmem>>, %arg4: memref<16x1xf32, #tpu.memory_space<vmem>>) attributes {dimension_semantics = [#tpu.dimension_semantics<parallel>], iteration_bounds = array<i64: 2>, scalar_prefetch = 0 : i64, scratch_operands = 0 : i64, tpu.core_type = #tpu.core_type<tc>, window_params = [{transform_indices = @transform_0, window_bounds = array<i64: 16, 2>}, {pipeline_mode = #tpu.pipeline_mode<synchronous>, transform_indices = @transform_1, window_bounds = array<i64: 4, 128, 128>}, {pipeline_mode = #tpu.pipeline_mode<synchronous>, transform_indices = @transform_2, window_bounds = array<i64: 4, 1, 128>}, {transform_indices = @transform_3, window_bounds = array<i64: 16, 1>}]} {
    %c0 = arith.constant 0 : index
    %c0_0 = arith.constant 0 : index
    %0 = vector.load %arg1[%c0, %c0_0] : memref<16x2xf32, #tpu.memory_space<vmem>>, vector<16x2xf32>
    %c0_1 = arith.constant 0 : index
    %c0_2 = arith.constant 0 : index
    %c0_3 = arith.constant 0 : index
    %1 = vector.load %arg3[%c0_1, %c0_2, %c0_3] : memref<4x1x128xf32, #tpu.memory_space<vmem>>, vector<1x1x128xf32>
    %2 = vector.shape_cast %1 : vector<1x1x128xf32> to vector<1x128xf32>
    %3 = vector.extract_strided_slice %0 {offsets = [0, 0], sizes = [16, 1], strides = [1, 1]} : vector<16x2xf32> to vector<16x1xf32>
    %c0_4 = arith.constant 0 : index
    %c0_5 = arith.constant 0 : index
    %c0_6 = arith.constant 0 : index
    %4 = vector.load %arg2[%c0_4, %c0_5, %c0_6] : memref<4x128x128xf32, #tpu.memory_space<vmem>>, vector<1x1x128xf32>
    %5 = vector.shape_cast %4 : vector<1x1x128xf32> to vector<1x128xf32>
    %6 = vector.broadcast %3 : vector<16x1xf32> to vector<16x128xf32>
    %7 = vector.broadcast %5 : vector<1x128xf32> to vector<16x128xf32>
    %8 = arith.mulf %6, %7 : vector<16x128xf32>
    %9 = vector.broadcast %2 : vector<1x128xf32> to vector<16x128xf32>
    %10 = arith.addf %9, %8 : vector<16x128xf32>
    %11 = vector.extract_strided_slice %0 {offsets = [0, 1], sizes = [16, 1], strides = [1, 1]} : vector<16x2xf32> to vector<16x1xf32>
    %c0_7 = arith.constant 0 : index
    %c1 = arith.constant 1 : index
    %c0_8 = arith.constant 0 : index
    %12 = vector.load %arg2[%c0_7, %c1, %c0_8] : memref<4x128x128xf32, #tpu.memory_space<vmem>>, vector<1x1x128xf32>
    %13 = vector.shape_cast %12 : vector<1x1x128xf32> to vector<1x128xf32>
    %14 = vector.broadcast %11 : vector<16x1xf32> to vector<16x128xf32>
    %15 = vector.broadcast %13 : vector<1x128xf32> to vector<16x128xf32>
    %16 = arith.mulf %14, %15 : vector<16x128xf32>
    %17 = arith.addf %10, %16 : vector<16x128xf32>
    %18 = math.tanh %17 : vector<16x128xf32>
    %c1_9 = arith.constant 1 : index
    %c0_10 = arith.constant 0 : index
    %c0_11 = arith.constant 0 : index
    %19 = vector.load %arg2[%c1_9, %c0_10, %c0_11] : memref<4x128x128xf32, #tpu.memory_space<vmem>>, vector<1x128x128xf32>
    %20 = vector.shape_cast %19 : vector<1x128x128xf32> to vector<128x128xf32>
    %cst = arith.constant dense<0.000000e+00> : vector<16x128xf32>
    %21 = tpu.matmul %18, %20, %cst {dimension_numbers = #tpu.dot_dimension_numbers<[1], [0], [0], [1], [0, 0, 1, 1], [], []>} : vector<16x128xf32>, vector<128x128xf32>, vector<16x128xf32> -> vector<16x128xf32>
    %c1_12 = arith.constant 1 : index
    %c0_13 = arith.constant 0 : index
    %c0_14 = arith.constant 0 : index
    %22 = vector.load %arg3[%c1_12, %c0_13, %c0_14] : memref<4x1x128xf32, #tpu.memory_space<vmem>>, vector<1x1x128xf32>
    %23 = vector.shape_cast %22 : vector<1x1x128xf32> to vector<1x128xf32>
    %24 = vector.broadcast %23 : vector<1x128xf32> to vector<16x128xf32>
    %25 = arith.addf %21, %24 : vector<16x128xf32>
    %26 = math.tanh %25 : vector<16x128xf32>
    %c2 = arith.constant 2 : index
    %c0_15 = arith.constant 0 : index
    %c0_16 = arith.constant 0 : index
    %27 = vector.load %arg2[%c2, %c0_15, %c0_16] : memref<4x128x128xf32, #tpu.memory_space<vmem>>, vector<1x128x128xf32>
    %28 = vector.shape_cast %27 : vector<1x128x128xf32> to vector<128x128xf32>
    %cst_17 = arith.constant dense<0.000000e+00> : vector<16x128xf32>
    %29 = tpu.matmul %26, %28, %cst_17 {dimension_numbers = #tpu.dot_dimension_numbers<[1], [0], [0], [1], [0, 0, 1, 1], [], []>} : vector<16x128xf32>, vector<128x128xf32>, vector<16x128xf32> -> vector<16x128xf32>
    %c2_18 = arith.constant 2 : index
    %c0_19 = arith.constant 0 : index
    %c0_20 = arith.constant 0 : index
    %30 = vector.load %arg3[%c2_18, %c0_19, %c0_20] : memref<4x1x128xf32, #tpu.memory_space<vmem>>, vector<1x1x128xf32>
    %31 = vector.shape_cast %30 : vector<1x1x128xf32> to vector<1x128xf32>
    %32 = vector.broadcast %31 : vector<1x128xf32> to vector<16x128xf32>
    %33 = arith.addf %29, %32 : vector<16x128xf32>
    %34 = math.tanh %33 : vector<16x128xf32>
    %c3 = arith.constant 3 : index
    %c0_21 = arith.constant 0 : index
    %c0_22 = arith.constant 0 : index
    %35 = vector.load %arg2[%c3, %c0_21, %c0_22] : memref<4x128x128xf32, #tpu.memory_space<vmem>>, vector<1x128x128xf32>
    %36 = vector.shape_cast %35 : vector<1x128x128xf32> to vector<128x128xf32>
    %cst_23 = arith.constant dense<0.000000e+00> : vector<16x128xf32>
    %37 = tpu.matmul %34, %36, %cst_23 {dimension_numbers = #tpu.dot_dimension_numbers<[1], [0], [0], [1], [0, 0, 1, 1], [], []>} : vector<16x128xf32>, vector<128x128xf32>, vector<16x128xf32> -> vector<16x128xf32>
    %c3_24 = arith.constant 3 : index
    %c0_25 = arith.constant 0 : index
    %c0_26 = arith.constant 0 : index
    %38 = vector.load %arg3[%c3_24, %c0_25, %c0_26] : memref<4x1x128xf32, #tpu.memory_space<vmem>>, vector<1x1x128xf32>
    %39 = vector.shape_cast %38 : vector<1x1x128xf32> to vector<1x128xf32>
    %40 = vector.broadcast %39 : vector<1x128xf32> to vector<16x128xf32>
    %41 = arith.addf %37, %40 : vector<16x128xf32>
    %42 = math.tanh %41 : vector<16x128xf32>
    %43 = vector.extract_strided_slice %42 {offsets = [0, 0], sizes = [16, 1], strides = [1, 1]} : vector<16x128xf32> to vector<16x1xf32>
    %c0_27 = arith.constant 0 : index
    %c0_28 = arith.constant 0 : index
    %44 = vector.load %arg4[%c0_27, %c0_28] : memref<16x1xf32, #tpu.memory_space<vmem>>, vector<16x1xf32>
    tpu.vector_store %arg4[%c0_27, %c0_28], %43 {strides = array<i32>} : memref<16x1xf32, #tpu.memory_space<vmem>>, vector<16x1xf32>,
    return
  }
  func.func @transform_0(%arg0: i32) -> (i32, i32) {
    %c0_i32 = arith.constant 0 : i32
    %c0_i32_0 = arith.constant 0 : i32
    return %arg0, %c0_i32 : i32, i32
  }
  func.func @transform_1(%arg0: i32) -> (i32, i32, i32) {
    %c0_i32 = arith.constant 0 : i32
    %c0_i32_0 = arith.constant 0 : i32
    %c0_i32_1 = arith.constant 0 : i32
    %c0_i32_2 = arith.constant 0 : i32
    return %c0_i32, %c0_i32_0, %c0_i32_1 : i32, i32, i32
  }
  func.func @transform_2(%arg0: i32) -> (i32, i32, i32) {
    %c0_i32 = arith.constant 0 : i32
    %c0_i32_0 = arith.constant 0 : i32
    %c0_i32_1 = arith.constant 0 : i32
    %c0_i32_2 = arith.constant 0 : i32
    return %c0_i32, %c0_i32_0, %c0_i32_1 : i32, i32, i32
  }
  func.func @transform_3(%arg0: i32) -> (i32, i32) {
    %c0_i32 = arith.constant 0 : i32
    %c0_i32_0 = arith.constant 0 : i32
    return %arg0, %c0_i32 : i32, i32
  }
}

</mosaic_0001>

<bundles_post_ra>
// kernel: a_call__.1
= control target key start
LH: loop header
LB: loop body
LE: loop exit
PB: predicated region body
PF: predicated region fallthrough
CT: control target
= control target key end

     0   :  { %8 = vsyncpa [#allocation3], 0  ;;  %s997_s12 = smov 0   ;;  %s1075_s0 = inlined_call_operand.vmem [shape: f32[32,2], index: 0, kind: input, shape index: {}]   ;;  %s1076_s1 = inlined_call_operand.hbm [shape: f32[4,128,128], index: 1, kind: input, shape index: {}]   ;;  %s1077_s2 = inlined_call_operand.vmem [shape: f32[4,1,128], index: 2, kind: input, shape index: {}]   ;;  %s1078_s3 = inlined_call_operand.vmem [shape: f32[32,1], index: 3, kind: output, shape index: {}]  }
   0x1 LB: > { %s613_s13 = sadd.s32 4294967295, %s970_s12   ;;  %p615_p0 = scmp.ge.s32.totalorder %s970_s12, 1  ;;  %s970_s12 = sphi %s997_s12, %s14_s12  }
   0x2   : > { %p113_p1 = scmp.lt.s32.totalorder %s970_s12, 3  ;;  %s972_s14 = smov [#allocation2]  }
   0x3   : > { %s125_s15 = sshll.u32 %s972_s14, 4  ;;  %p1011_p3 = scmp.eq.s32.totalorder %s613_s13, 0  ;;  %s126_s15 = int_to_ptr.vmem [resolvable:$true] %s125_s15 }
   0x4   : > { %p1005_p2 = pnand %p615_p0, %p113_p1  ;;  %s932_s21 = scalar_lea.hbm %s1076_s1, 8192 }
   0x5   : > { %s1083_s17 = scalar_select %p1011_p3, 1, 0 }
   0x6   : > { %s1082_s16 = scalar_select %p1005_p2, 1, 0 }
   0x7   : > { %p894_p4 = pneg %p1005_p2  ;;  %p933_p6 = scmp.ne.s32.totalorder %s1076_s1, %s932_s21 }
   0x8   : > { %p939_p10 = scmp.lt.u32.totalorder %s932_s21, %s1076_s1 }
   0x9   : > { %p1019_p5 = pnand %p1011_p3, %p894_p4 }
   0xb   : > { %p934_p7 = pneg %p1019_p5 }
   0xd   : > { %p935_p8 = pnand %p934_p7, %p933_p6 }
   0xf   : > { %p936_p9 = pneg %p935_p8 }
  0x11   : > { %p941_p11 = pnand %p939_p10, %p936_p9 }
  0x13   : > { %944 = shalt.err (!%p941_p11)
}
  0x14   : > { %s945_s26 = scalar_lea.vmem %s126_s15, 8192  ;;  %p953_p1 = scmp.lt.s32.totalorder %s126_s15, %s126_s15 }
  0x15   : > { %p946_p12 = scmp.ne.s32.totalorder %s126_s15, %s945_s26  ;;  %p954_p4 = scmp.lt.s32.totalorder %s945_s26, %s945_s26 }
  0x17   : > { %p948_p13 = pnand %p946_p12, %p934_p7  ;;  %p955_p3 = por %p954_p4, %p953_p1 }
  0x19   : > { %p949_p0 = pneg %p948_p13 }
  0x1b   : > { %p956_p2 = pnand %p955_p3, %p949_p0 }
  0x1d   : > { %959 = shalt.err (!%p956_p2)
}
  0x1e   : > { %s973_s27 = smov 128   ;;  %s974_s28 = smov 8  }
  0x1f   : > { %897 = dma.hbm_to_vmem [thread:$0]  (!%p1019_p5), %s1076_s1, 8192, %s126_s15, [#allocation3], %s973_s27, %s973_s27, %s974_s28  }
  0x20   : > { %p1085_p6 = scmp.ne.s32.totalorder %s1082_s16, 0 }
  0x21   : > { %p1086_p8 = scmp.ne.s32.totalorder (!%p1085_p6), %s1083_s17, 0 }
  0x22   : > { %153 = sbr.rel (%p1085_p6) target bundleno = 880 (0x370), region = 32 }
  0x29   : > { %965 = dma.done.wait (%p1086_p8), [#allocation3], 8192  }
  0x2a   : > { %967 = vsyncadd (%p1086_p8), [#allocation3], 4294959104  ;;  %s620_s4 = sshll.u32 %s613_s13, 1  ;;  %v975_v0 = vmov 1   ;;  %v976_v1 = vmov 0   ;;  %v237_v3 = vld [vmem:[#allocation2 + $0x80] sm:$0xff] }
  0x2b   : > { %914 = vset.pattern.permute.xlu1 %v975_v0  ;;  %913 = vset.pattern.permute.xlu0 %v976_v1  ;;  %p178_p2 = scmp.lt.s32.totalorder %s620_s4, 3  ;;  %v238_v4 = vld [vmem:[#allocation2 + $0x88] sm:$0xff]  ;;  %v239_v5 = vld [vmem:[#allocation2 + $0x90] sm:$0xff]  ;;  %v240_v6 = vld [vmem:[#allocation2 + $0x98] sm:$0xff]  ;;  %vm542_vm0 = vcmask 7168  }
  0x2c   : > { %v794_v8 = vpack.c.bf16 %v238_v4, %v237_v3  ;;  %v798_v9 = vpack.c.bf16 %v240_v6, %v239_v5  ;;  %v241_v10 = vld [vmem:[#allocation2 + $0xa0] sm:$0xff]  ;;  %v242_v11 = vld [vmem:[#allocation2 + $0xa8] sm:$0xff]  ;;  %v243_v13 = vld [vmem:[#allocation2 + $0xb0] sm:$0xff] }
  0x2d   : > { %s1088_s4 = smov (!%p178_p2, %s620_s4), 3  ;;  %v802_v12 = vpack.c.bf16 %v242_v11, %v241_v10  ;;  %v244_v14 = vld [vmem:[#allocation2 + $0xb8] sm:$0xff]  ;;  %v245_v16 = vld [vmem:[#allocation2 + $0xc0] sm:$0xff]  ;;  %v246_v17 = vld [vmem:[#allocation2 + $0xc8] sm:$0xff] }
  0x2e   : > { %s621_s5 = sshll.u32 %s1088_s4, 3  ;;  %795 = vmatprep.subr.bf16.mxu0 %v794_v8  ;;  %v806_v15 = vpack.c.bf16 %v244_v14, %v243_v13  ;;  %v810_v18 = vpack.c.bf16 %v246_v17, %v245_v16  ;;  %v247_v19 = vld [vmem:[#allocation2 + $0xd0] sm:$0xff]  ;;  %v248_v20 = vld [vmem:[#allocation2 + $0xd8] sm:$0xff]  ;;  %v249_v22 = vld [vmem:[#allocation2 + $0xe0] sm:$0xff] }
  0x2f   : > { %s181_s8 = scalar_lea.vmem %s1075_s0, %s621_s5  ;;  %797 = vmatpush3.bf16.msra.mxu0 %v794_v8  ;;  %v814_v21 = vpack.c.bf16 %v248_v20, %v247_v19  ;;  %v250_v23 = vld [vmem:[#allocation2 + $0xe8] sm:$0xff]  ;;  %v339_v24 = vld [vmem:[#allocation2 + $0x100] sm:$0xff]  ;;  %v341_v26 = vld [vmem:[#allocation2 + $0x110] sm:$0xff]  ;;  %s187_s20 = scalar_lea.vmem %s1078_s3, %s621_s5 }
  0x30   : > { %v189_v2 = vld [vmem:[%s181_s8] sm:$0xff]  ;;  %v190_v7 = vld [vmem:[%s181_s8 + $0x8] sm:$0xff]  ;;  %799 = vmatprep.subr.bf16.mxu0 %v798_v9  ;;  %v818_v27 = vpack.c.bf16 %v250_v23, %v249_v22  ;;  %v251_v28 = vld [vmem:[#allocation2 + $0xf0] sm:$0xff] }
  0x31   : > { %219 = vperm.xlu1 %914, %v189_v2   ;;  %195 = vperm.xlu0 %913, %v189_v2   ;;  %v340_v25 = vld [vmem:[#allocation2 + $0x108] sm:$0xff]  ;;  %v342_v30 = vld [vmem:[#allocation2 + $0x118] sm:$0xff]  ;;  %v343_v33 = vld [vmem:[#allocation2 + $0x120] sm:$0xff] }
  0x32   : > { %v826_v29 = vpack.c.bf16 %v340_v25, %v339_v24  ;;  %v252_v31 = vld [vmem:[#allocation2 + $0xf8] sm:$0xff]  ;;  %v830_v32 = vpack.c.bf16 %v342_v30, %v341_v26  ;;  %v344_v34 = vld [vmem:[#allocation2 + $0x128] sm:$0xff]  ;;  %v345_v37 = vld [vmem:[#allocation2 + $0x130] sm:$0xff] }
  0x33   : > { %801 = vmatpush3.bf16.msra.mxu0 %v798_v9  ;;  %v822_v35 = vpack.c.bf16 %v252_v31, %v251_v28  ;;  %v834_v36 = vpack.c.bf16 %v344_v34, %v343_v33  ;;  %v346_v38 = vld [vmem:[#allocation2 + $0x138] sm:$0xff]  ;;  %v626_v40 = vld [vmem:[#allocation2 + $0x1] ss:$0 sm:$0xff]  ;;  %v624_v41 = vld [vmem:[#allocation2] ss:$0 sm:$0xff] }
  0x34   : > { %803 = vmatprep.subr.bf16.mxu0 %v802_v12  ;;  %827 = vmatprep.subr.bf16.mxu1 %v826_v29  ;;  %v838_v39 = vpack.c.bf16 %v346_v38, %v345_v37  ;;  %v625_v43 = vld [vmem:[%s1077_s2] ss:$0 sm:$0xff]  ;;  %v348_v58 = vld [vmem:[#allocation2 + $0x148] sm:$0xff]  ;;  %v349_v60 = vld [vmem:[#allocation2 + $0x150] sm:$0xff] }
  0x35   : > { %223 = vperm.xlu1 %914, %v190_v7   ;;  %200 = vperm.xlu0 %913, %v190_v7   ;;  %v347_v57 = vld [vmem:[#allocation2 + $0x140] sm:$0xff]  ;;  %v350_v61 = vld [vmem:[#allocation2 + $0x158] sm:$0xff]  ;;  %v353_v1 = vld [vmem:[#allocation2 + $0x170] sm:$0xff] }
  0x36   : > { %829 = vmatpush3.bf16.msra.mxu1 %v826_v29  ;;  %v842_v59 = vpack.c.bf16 %v348_v58, %v347_v57  ;;  %v846_v62 = vpack.c.bf16 %v350_v61, %v349_v60  ;;  %v351_v63 = vld [vmem:[#allocation2 + $0x160] sm:$0xff]  ;;  %v354_v3 = vld [vmem:[#allocation2 + $0x178] sm:$0xff]  ;;  %v442_v6 = vld [vmem:[#allocation2 + $0x188] sm:$0xff] }
  0x37   : > { %805 = vmatpush3.bf16.msra.mxu0 %v802_v12  ;;  %831 = vmatprep.subr.bf16.mxu1 %v830_v32  ;;  %v854_v4 = vpack.c.bf16 %v354_v3, %v353_v1  ;;  %v441_v5 = vld [vmem:[#allocation2 + $0x180] sm:$0xff]  ;;  %v443_v7 = vld [vmem:[#allocation2 + $0x190] sm:$0xff]  ;;  %v444_v9 = vld [vmem:[#allocation2 + $0x198] sm:$0xff] }
  0x38   : > { %807 = vmatprep.subr.bf16.mxu0 %v806_v15  ;;  %v858_v8 = vpack.c.bf16 %v442_v6, %v441_v5  ;;  %v862_v10 = vpack.c.bf16 %v444_v9, %v443_v7  ;;  %v445_v11 = vld [vmem:[#allocation2 + $0x1a0] sm:$0xff]  ;;  %v446_v12 = vld [vmem:[#allocation2 + $0x1a8] sm:$0xff]  ;;  %v447_v14 = vld [vmem:[#allocation2 + $0x1b0] sm:$0xff] }
  0x39   : > { %915 = vset.pattern.permute.xlu0 %v975_v0  ;;  %v352_v0 = vld [vmem:[#allocation2 + $0x168] sm:$0xff]  ;;  %v866_v13 = vpack.c.bf16 %v446_v12, %v445_v11  ;;  %v628_v17 = vld [vmem:[%s1077_s2 + $0x1] ss:$0 sm:$0xff]  ;;  %v452_v28 = vld [vmem:[#allocation2 + $0x1d8] sm:$0xff] }
  0x3a   : > { %833 = vmatpush3.bf16.msra.mxu1 %v830_v32  ;;  %v850_v2 = vpack.c.bf16 %v352_v0, %v351_v63  ;;  %v449_v24 = vld [vmem:[#allocation2 + $0x1c0] sm:$0xff]  ;;  %v450_v25 = vld [vmem:[#allocation2 + $0x1c8] sm:$0xff]  ;;  %v455_v32 = vld [vmem:[#allocation2 + $0x1f0] sm:$0xff] }
  0x3b   : > { %809 = vmatpush3.bf16.msra.mxu0 %v806_v15  ;;  %835 = vmatprep.subr.bf16.mxu1 %v834_v36  ;;  %v448_v15 = vld [vmem:[#allocation2 + $0x1b8] sm:$0xff]  ;;  %v874_v26 = vpack.c.bf16 %v450_v25, %v449_v24  ;;  %v453_v30 = vld [vmem:[#allocation2 + $0x1e0] sm:$0xff]  ;;  %v454_v31 = vld [vmem:[#allocation2 + $0x1e8] sm:$0xff] }
  0x3c   : > { %811 = vmatprep.subr.bf16.mxu0 %v810_v18  ;;  %v870_v16 = vpack.c.bf16 %v448_v15, %v447_v14  ;;  %v882_v33 = vpack.c.bf16 %v454_v31, %v453_v30  ;;  %v456_v34 = vld [vmem:[#allocation2 + $0x1f8] sm:$0xff] }
  0x3e   : > { %837 = vmatpush3.bf16.msra.mxu1 %v834_v36  ;;  %v630_v36 = vld [vmem:[%s1077_s2 + $0x2] ss:$0 sm:$0xff] }
  0x3f   : > { %813 = vmatpush3.bf16.msra.mxu0 %v810_v18  ;;  %839 = vmatprep.subr.bf16.mxu1 %v838_v39 }
  0x40   : > { %815 = vmatprep.subr.bf16.mxu0 %v814_v21 }
  0x42   : > { %841 = vmatpush3.bf16.msra.mxu1 %v838_v39 }
  0x43   : > { %817 = vmatpush3.bf16.msra.mxu0 %v814_v21  ;;  %843 = vmatprep.subr.bf16.mxu1 %v842_v59 }
  0x44   : > { %819 = vmatprep.subr.bf16.mxu0 %v818_v27 }
  0x46   : > { %845 = vmatpush3.bf16.msra.mxu1 %v842_v59 }
  0x47   : > { %821 = vmatpush3.bf16.msra.mxu0 %v818_v27  ;;  %847 = vmatprep.subr.bf16.mxu1 %v846_v62  ;;  %v451_v27 = vld [vmem:[#allocation2 + $0x1d0] sm:$0xff] }
  0x48   : > { %823 = vmatprep.subr.bf16.mxu0 %v822_v35  ;;  %v878_v29 = vpack.c.bf16 %v452_v28, %v451_v27 }
  0x4a   : > { %849 = vmatpush3.bf16.msra.mxu1 %v846_v62 }
  0x4b   : > { %825 = vmatpush3.bf16.msra.mxu0 %v822_v35  ;;  %851 = vmatprep.subr.bf16.mxu1 %v850_v2  ;;  %v886_v35 = vpack.c.bf16 %v456_v34, %v455_v32 }
  0x4c   : > { %859 = vmatprep.subr.bf16.mxu0 %v858_v8 }
  0x4e   : > { %853 = vmatpush3.bf16.msra.mxu1 %v850_v2 }
  0x4f   : > { %855 = vmatprep.subr.bf16.mxu1 %v854_v4 }
  0x52   : > { %857 = vmatpush3.bf16.msra.mxu1 %v854_v4 }
  0xb0   : > { %v220_v42 = vpop.permute.xlu1 %219  ;;  %v196_v44 = vpop.permute.xlu0 %195 }
  0xb1   : > { %v230_v45 = vmul.f32 %v626_v40, %v220_v42  ;;  %v207_v46 = vmul.f32 %v624_v41, %v196_v44 }
  0xb3   : > { %v215_v47 = vadd.f32 %v625_v43, %v207_v46 }
  0xb4   : > { %v224_v48 = vpop.permute.xlu1 %223  ;;  %v201_v49 = vpop.permute.xlu0 %200 }
  0xb5   : > { %v208_v50 = vmul.f32 %v624_v41, %v201_v49  ;;  %v232_v51 = vadd.f32 %v230_v45, %v215_v47  ;;  %v231_v52 = vmul.f32 %v626_v40, %v224_v48 }
  0xb7   : > { %v216_v53 = vadd.f32 %v625_v43, %v208_v50  ;;  %916 = vtanh.f32 %v232_v51  ;;  %v632_v43 = vld [vmem:[%s1077_s2 + $0x3] ss:$0 sm:$0xff] }
  0xb9   : > { %v233_v54 = vadd.f32 %v231_v52, %v216_v53 }
  0xbb   : > { %918 = vtanh.f32 %v233_v54 }
  0xc1   : > { %v917_v55 = vpop.eup %916 }
  0xc2   : > { %721 = vmatprep.mubr.f32.mxu0 %v917_v55 }
  0xc5   : > { %v919_v56 = vpop.eup %918 }
  0xc6   : > { %722 = vmatmul.mubr.f32.vlgmr.msra.gmra.mrb[0].mxu0 %v919_v56 }
  0xc7   : > { %861 = vmatpush3.bf16.msra.mxu0 %v858_v8 }
  0xc8   : > { %863 = vmatprep.subr.bf16.mxu0 %v862_v10 }
  0xcb   : > { %865 = vmatpush3.bf16.msra.mxu0 %v862_v10 }
  0xcc   : > { %867 = vmatprep.subr.bf16.mxu0 %v866_v13 }
  0xcf   : > { %869 = vmatpush3.bf16.msra.mxu0 %v866_v13 }
  0xd0   : > { %871 = vmatprep.subr.bf16.mxu0 %v870_v16 }
  0xd3   : > { %873 = vmatpush3.bf16.msra.mxu0 %v870_v16 }
  0xd4   : > { %875 = vmatprep.subr.bf16.mxu0 %v874_v26 }
  0xd7   : > { %877 = vmatpush3.bf16.msra.mxu0 %v874_v26 }
  0xd8   : > { %879 = vmatprep.subr.bf16.mxu0 %v878_v29 }
  0xdb   : > { %881 = vmatpush3.bf16.msra.mxu0 %v878_v29 }
  0xdc   : > { %883 = vmatprep.subr.bf16.mxu0 %v882_v33 }
  0xdf   : > { %885 = vmatpush3.bf16.msra.mxu0 %v882_v33 }
  0xe0   : > { %887 = vmatprep.subr.bf16.mxu0 %v886_v35 }
  0xe3   : > { %889 = vmatpush3.bf16.msra.mxu0 %v886_v35 }
 0x199   : > { %v723_v18 = vpop.f32.mrb[0].mxu0 }
 0x19a   : > { %v333_v19 = vadd.f32 %v723_v18, %v628_v17  ;;  %v327_v20 = vpop.f32.mrb[1].mxu0 }
 0x19b   : > { %v328_v21 = vadd.f32 %v628_v17, %v327_v20 }
 0x19d   : > { %920 = vtanh.f32 %v328_v21 }
 0x19e   : > { %922 = vtanh.f32 %v333_v19 }
 0x1a7   : > { %v921_v22 = vpop.eup %920 }
 0x1a8   : > { %v923_v23 = vpop.eup %922  ;;  %756 = vmatprep.mubr.f32.mxu1 %v921_v22 }
 0x1a9   : > { %757 = vmatmul.mubr.f32.vlgmr.msra.gmra.mrb[0].mxu1 %v923_v23 }
 0x27c   : > { %v758_v37 = vpop.f32.mrb[0].mxu1 }
 0x27d   : > { %v435_v38 = vadd.f32 %v758_v37, %v630_v36  ;;  %v429_v39 = vpop.f32.mrb[1].mxu1 }
 0x27e   : > { %v430_v40 = vadd.f32 %v630_v36, %v429_v39 }
 0x280   : > { %924 = vtanh.f32 %v430_v40 }
 0x281   : > { %926 = vtanh.f32 %v435_v38 }
 0x28a   : > { %v925_v41 = vpop.eup %924 }
 0x28b   : > { %v927_v42 = vpop.eup %926  ;;  %791 = vmatprep.mubr.f32.mxu0 %v925_v41 }
 0x28c   : > { %792 = vmatmul.mubr.f32.vlgmr.msra.gmra.mrb[2].mxu0 %v927_v42 }
 0x35f   : > { %v793_v44 = vpop.f32.mrb[2].mxu0 }
 0x360   : > { %v537_v45 = vadd.f32 %v793_v44, %v632_v43  ;;  %v531_v46 = vpop.f32.mrb[3].mxu0 }
 0x361   : > { %v532_v47 = vadd.f32 %v632_v43, %v531_v46 }
 0x363   : > { %928 = vtanh.f32 %v532_v47 }
 0x364   : > { %930 = vtanh.f32 %v537_v45 }
 0x36d   : > { %v929_v48 = vpop.eup %928 }
 0x36e   : > { %v931_v49 = vpop.eup %930  ;;  %543 = vst.msk [vmem:[%s187_s20] sm:$0xff] %vm542_vm0, %v929_v48 }
 0x36f   : > { %544 = vst.msk [vmem:[%s187_s20 + $0x8] sm:$0xff] %vm542_vm0, %v931_v49 }
 0x370 PF: > { %s14_s12 = sadd.s32 1, %s970_s12  }
 0x371   : > { %p11_p3 = scmp.ge.s32.totalorder %s14_s12, 4  }
 0x373   :  { %13 = sbr.rel (!%p11_p3) target bundleno = 1 (0x1), region = 73 }
 0x37a   :  { %567 = vsyncpa [#allocation3], 1 }
 0x37b   :  { %569 = vsyncpa [#allocation3 + $0x1], 1 }

</bundles_post_ra>
